<compile_context>
chip_gen: v5e
topology: v5e:2x2
jax: 0.10.0
libtpu: 0.0.40
codegen_flags: <defaults>
</compile_context>

<pallas_src>
import jax
import jax.numpy as jnp
from jax.experimental import pallas as pl
from jax.experimental.pallas import tpu as pltpu


def _round_up(x, m):
    return (x + m - 1) // m * m


def mlp_kernel(x_ref, w1_ref, b1_ref, w2_ref, b2_ref, w3_ref, b3_ref, o_ref):
    # x arrives as raw f32; cast to bf16 in-kernel (hides under DMA slack).
    # All dots: bf16 operands on the MXU, f32 accumulation; activations in f32.
    x = x_ref[...].astype(jnp.bfloat16)

    # Layer 1: Linear(input -> hidden) + ReLU   (K = true input_dim, unpadded)
    h1 = jnp.dot(x, w1_ref[...], preferred_element_type=jnp.float32) + b1_ref[...]
    h1 = jnp.maximum(h1, 0.0)

    # Layer 2: Linear(hidden -> hidden) + Sigmoid
    h2 = jnp.dot(h1.astype(jnp.bfloat16), w2_ref[...],
                 preferred_element_type=jnp.float32) + b2_ref[...]
    h2 = jax.nn.sigmoid(h2)

    # Layer 3: Linear(hidden -> output) + Sigmoid
    h3 = jnp.dot(h2.astype(jnp.bfloat16), w3_ref[...],
                 preferred_element_type=jnp.float32) + b3_ref[...]
    o_ref[...] = jax.nn.sigmoid(h3).astype(o_ref.dtype)   # bf16 store


def prepare_params(params):
    """One-time glue: transpose PyTorch-convention weights ([out, in] -> [in, out]),
    zero-pad the *output* feature dims to multiples of 128 (the input dim of W1
    stays at its true size -- the x block uses the full-extent last dim), cast
    matmul operands to bf16 and biases to f32 [1, out_pad]."""
    w1, b1 = params["w1"], params["b1"]
    w2, b2 = params["w2"], params["b2"]
    w3, b3 = params["w3"], params["b3"]

    in_dim, hid, out = w1.shape[1], w1.shape[0], w3.shape[0]
    hid_p, out_p = _round_up(hid, 128), _round_up(out, 128)

    def pad_w(w_t, rows, cols):  # w_t is [in, out]
        return jnp.pad(w_t, ((0, rows - w_t.shape[0]),
                             (0, cols - w_t.shape[1]))).astype(jnp.bfloat16)

    def pad_b(b, cols):
        return jnp.pad(b, (0, cols - b.shape[0]))[None, :].astype(jnp.float32)

    return {
        "w1": pad_w(w1.T, in_dim, hid_p), "b1": pad_b(b1, hid_p),   # K unpadded
        "w2": pad_w(w2.T, hid_p, hid_p), "b2": pad_b(b2, hid_p),
        "w3": pad_w(w3.T, hid_p, out_p), "b3": pad_b(b3, out_p),
        "out_dim": out,
    }


def mlp_forward(x, p, *, block_batch=2048, vmem_limit_bytes=None):
    """x: [B, input_dim] float32.  p: output of prepare_params.
    Returns [B, output_dim] float32.
    block_batch: max batch rows per grid step (multiple of 16).  On v5e/v6e
    it may be raised to 4096 together with vmem_limit_bytes≈56<<20; keep it at
    2048 on v7x (64 MiB physical VMEM, two TensorCores need >=2 grid steps)."""
    in_dim, hid_p = p["w1"].shape
    out_p = p["w3"].shape[1]
    out_dim = p["out_dim"]

    B, x_in = x.shape
    assert x_in == in_dim, (x_in, in_dim)

    # Balanced batch tiling: at most `block_batch` rows per step, multiple of
    # 16 (bf16 sublane packing), >=2 steps when there is enough work so the
    # "parallel" axis can shard across v7x's two TensorCores.  Balancing the
    # tiles keeps batch padding to < 16 rows per tile for ragged B.
    min_steps = 2 if B >= 512 else 1
    num_tiles = max(pl.cdiv(B, block_batch), min_steps)
    tb = _round_up(pl.cdiv(B, num_tiles), 16)
    b_pad = _round_up(B, tb)
    if b_pad != B:
        # Batch-only pad (feature axis untouched); no-op for aligned batches.
        x = jnp.pad(x, ((0, b_pad - B), (0, 0)))

    res = lambda shape: pl.BlockSpec(shape, lambda i: (0, 0))  # VMEM-resident

    out = pl.pallas_call(
        mlp_kernel,
        out_shape=jax.ShapeDtypeStruct((b_pad, out_p), jnp.bfloat16),
        grid=(b_pad // tb,),
        in_specs=[
            pl.BlockSpec((tb, in_dim), lambda i: (i, 0)),   # raw f32 x streams over batch
            res((in_dim, hid_p)), res((1, hid_p)),
            res((hid_p, hid_p)), res((1, hid_p)),
            res((hid_p, out_p)), res((1, out_p)),
        ],
        out_specs=pl.BlockSpec((tb, out_p), lambda i: (i, 0)),
        compiler_params=pltpu.CompilerParams(
            dimension_semantics=("parallel",),
            vmem_limit_bytes=vmem_limit_bytes),
    )(x, p["w1"], p["b1"], p["w2"], p["b2"], p["w3"], p["b3"])

    # Small unpadded view for the caller (PyTorch returns f32).  Consumers that
    # can work on the padded (b_pad, 128) bf16 slab should skip this slice.
    return out[:B, :out_dim].astype(jnp.float32)


def init_params(key, input_dim=784, hidden_nodes=100, output_dim=10):
    """Deterministic init mimicking nn.Linear default (U[-1/sqrt(fan_in), 1/sqrt(fan_in)]).
    Weights are in PyTorch convention: W [out, in], b [out]."""
    ks = jax.random.split(key, 6)

    def lin(kw, kb, fan_in, fan_out):
        bound = 1.0 / jnp.sqrt(fan_in)
        w = jax.random.uniform(kw, (fan_out, fan_in), jnp.float32, -bound, bound)
        b = jax.random.uniform(kb, (fan_out,), jnp.float32, -bound, bound)
        return w, b

    w1, b1 = lin(ks[0], ks[1], input_dim, hidden_nodes)
    w2, b2 = lin(ks[2], ks[3], hidden_nodes, hidden_nodes)
    w3, b3 = lin(ks[4], ks[5], hidden_nodes, output_dim)
    return {"w1": w1, "b1": b1, "w2": w2, "b2": b2, "w3": w3, "b3": b3}


def mlp_ref(x, p):
    h = jnp.maximum(x @ p["w1"].T + p["b1"], 0.0)
    h = jax.nn.sigmoid(h @ p["w2"].T + p["b2"])
    return jax.nn.sigmoid(h @ p["w3"].T + p["b3"])


if __name__ == "__main__":
    key = jax.random.PRNGKey(0)
    k_x, k_p = jax.random.split(key)

    # Small shapes consistent with the module defaults.
    batch, input_dim, hidden, out_dim = 8, 784, 100, 10
    x = jax.random.normal(k_x, (batch, input_dim), jnp.float32)
    params = init_params(k_p, input_dim, hidden, out_dim)

    prepared = prepare_params(params)          # one-time pad / transpose / cast
    y = mlp_forward(x, prepared)
    jax.block_until_ready(y)

    y_ref = mlp_ref(x, params)                 # pure-f32 reference
    assert y.shape == (batch, out_dim)
    # bf16 matmul operands + bf16 output store (f32 accumulation) => compare
    # to the f32 reference with a tolerance covering the bf16 rounding.
    max_err = float(jnp.max(jnp.abs(y - y_ref)))
    assert max_err < 3e-2, max_err

    print("KERNEL_OK")
</pallas_src>

<mosaic_0001>
module attributes {stable_mosaic.version = 11 : i64} {
  func.func @mlp_kernel(%arg0: i32, %arg1: memref<16x784xf32, #tpu.memory_space<vmem>>, %arg2: memref<784x128xbf16, #tpu.memory_space<vmem>>, %arg3: memref<1x128xf32, #tpu.memory_space<vmem>>, %arg4: memref<128x128xbf16, #tpu.memory_space<vmem>>, %arg5: memref<1x128xf32, #tpu.memory_space<vmem>>, %arg6: memref<128x128xbf16, #tpu.memory_space<vmem>>, %arg7: memref<1x128xf32, #tpu.memory_space<vmem>>, %arg8: memref<16x128xbf16, #tpu.memory_space<vmem>>) attributes {dimension_semantics = [#tpu.dimension_semantics<parallel>], iteration_bounds = array<i64: 1>, scalar_prefetch = 0 : i64, scratch_operands = 0 : i64, tpu.core_type = #tpu.core_type<tc>, window_params = [{transform_indices = @transform_0, window_bounds = array<i64: 16, 784>}, {pipeline_mode = #tpu.pipeline_mode<synchronous>, transform_indices = @transform_1, window_bounds = array<i64: 784, 128>}, {pipeline_mode = #tpu.pipeline_mode<synchronous>, transform_indices = @transform_2, window_bounds = array<i64: 1, 128>}, {pipeline_mode = #tpu.pipeline_mode<synchronous>, transform_indices = @transform_3, window_bounds = array<i64: 128, 128>}, {pipeline_mode = #tpu.pipeline_mode<synchronous>, transform_indices = @transform_4, window_bounds = array<i64: 1, 128>}, {pipeline_mode = #tpu.pipeline_mode<synchronous>, transform_indices = @transform_5, window_bounds = array<i64: 128, 128>}, {pipeline_mode = #tpu.pipeline_mode<synchronous>, transform_indices = @transform_6, window_bounds = array<i64: 1, 128>}, {transform_indices = @transform_7, window_bounds = array<i64: 16, 128>}]} {
    %c0 = arith.constant 0 : index
    %c0_0 = arith.constant 0 : index
    %0 = vector.load %arg1[%c0, %c0_0] : memref<16x784xf32, #tpu.memory_space<vmem>>, vector<16x784xf32>
    %1 = arith.truncf %0 : vector<16x784xf32> to vector<16x784xbf16>
    %c0_1 = arith.constant 0 : index
    %c0_2 = arith.constant 0 : index
    %2 = vector.load %arg2[%c0_1, %c0_2] : memref<784x128xbf16, #tpu.memory_space<vmem>>, vector<784x128xbf16>
    %cst = arith.constant dense<0.000000e+00> : vector<16x128xf32>
    %3 = tpu.matmul %1, %2, %cst {dimension_numbers = #tpu.dot_dimension_numbers<[1], [0], [0], [1], [0, 0, 1, 1], [], []>} : vector<16x784xbf16>, vector<784x128xbf16>, vector<16x128xf32> -> vector<16x128xf32>
    %c0_3 = arith.constant 0 : index
    %c0_4 = arith.constant 0 : index
    %4 = vector.load %arg3[%c0_3, %c0_4] : memref<1x128xf32, #tpu.memory_space<vmem>>, vector<1x128xf32>
    %5 = vector.broadcast %4 : vector<1x128xf32> to vector<16x128xf32>
    %6 = arith.addf %3, %5 : vector<16x128xf32>
    %cst_5 = arith.constant 0.000000e+00 : f32
    %7 = vector.broadcast %cst_5 : f32 to vector<16x128xf32>
    %8 = arith.maximumf %6, %7 : vector<16x128xf32>
    %9 = arith.truncf %8 : vector<16x128xf32> to vector<16x128xbf16>
    %c0_6 = arith.constant 0 : index
    %c0_7 = arith.constant 0 : index
    %10 = vector.load %arg4[%c0_6, %c0_7] : memref<128x128xbf16, #tpu.memory_space<vmem>>, vector<128x128xbf16>
    %cst_8 = arith.constant dense<0.000000e+00> : vector<16x128xf32>
    %11 = tpu.matmul %9, %10, %cst_8 {dimension_numbers = #tpu.dot_dimension_numbers<[1], [0], [0], [1], [0, 0, 1, 1], [], []>} : vector<16x128xbf16>, vector<128x128xbf16>, vector<16x128xf32> -> vector<16x128xf32>
    %c0_9 = arith.constant 0 : index
    %c0_10 = arith.constant 0 : index
    %12 = vector.load %arg5[%c0_9, %c0_10] : memref<1x128xf32, #tpu.memory_space<vmem>>, vector<1x128xf32>
    %13 = vector.broadcast %12 : vector<1x128xf32> to vector<16x128xf32>
    %14 = arith.addf %11, %13 : vector<16x128xf32>
    %15 = arith.negf %14 : vector<16x128xf32>
    %16 = math.exp %15 : vector<16x128xf32>
    %cst_11 = arith.constant 1.000000e+00 : f32
    %17 = vector.broadcast %cst_11 : f32 to vector<16x128xf32>
    %18 = arith.addf %17, %16 : vector<16x128xf32>
    %19 = arith.divf %17, %18 : vector<16x128xf32>
    %20 = arith.truncf %19 : vector<16x128xf32> to vector<16x128xbf16>
    %c0_12 = arith.constant 0 : index
    %c0_13 = arith.constant 0 : index
    %21 = vector.load %arg6[%c0_12, %c0_13] : memref<128x128xbf16, #tpu.memory_space<vmem>>, vector<128x128xbf16>
    %cst_14 = arith.constant dense<0.000000e+00> : vector<16x128xf32>
    %22 = tpu.matmul %20, %21, %cst_14 {dimension_numbers = #tpu.dot_dimension_numbers<[1], [0], [0], [1], [0, 0, 1, 1], [], []>} : vector<16x128xbf16>, vector<128x128xbf16>, vector<16x128xf32> -> vector<16x128xf32>
    %c0_15 = arith.constant 0 : index
    %c0_16 = arith.constant 0 : index
    %23 = vector.load %arg7[%c0_15, %c0_16] : memref<1x128xf32, #tpu.memory_space<vmem>>, vector<1x128xf32>
    %24 = vector.broadcast %23 : vector<1x128xf32> to vector<16x128xf32>
    %25 = arith.addf %22, %24 : vector<16x128xf32>
    %26 = arith.negf %25 : vector<16x128xf32>
    %27 = math.exp %26 : vector<16x128xf32>
    %cst_17 = arith.constant 1.000000e+00 : f32
    %28 = vector.broadcast %cst_17 : f32 to vector<16x128xf32>
    %29 = arith.addf %28, %27 : vector<16x128xf32>
    %30 = arith.divf %28, %29 : vector<16x128xf32>
    %31 = arith.truncf %30 : vector<16x128xf32> to vector<16x128xbf16>
    %c0_18 = arith.constant 0 : index
    %c0_19 = arith.constant 0 : index
    %32 = vector.load %arg8[%c0_18, %c0_19] : memref<16x128xbf16, #tpu.memory_space<vmem>>, vector<16x128xbf16>
    tpu.vector_store %arg8[%c0_18, %c0_19], %31 {strides = array<i32>} : memref<16x128xbf16, #tpu.memory_space<vmem>>, vector<16x128xbf16>,
    return
  }
  func.func @transform_0(%arg0: i32) -> (i32, i32) {
    %c0_i32 = arith.constant 0 : i32
    %c0_i32_0 = arith.constant 0 : i32
    return %arg0, %c0_i32 : i32, i32
  }
  func.func @transform_1(%arg0: i32) -> (i32, i32) {
    %c0_i32 = arith.constant 0 : i32
    %c0_i32_0 = arith.constant 0 : i32
    %c0_i32_1 = arith.constant 0 : i32
    return %c0_i32, %c0_i32_0 : i32, i32
  }
  func.func @transform_2(%arg0: i32) -> (i32, i32) {
    %c0_i32 = arith.constant 0 : i32
    %c0_i32_0 = arith.constant 0 : i32
    %c0_i32_1 = arith.constant 0 : i32
    return %c0_i32, %c0_i32_0 : i32, i32
  }
  func.func @transform_3(%arg0: i32) -> (i32, i32) {
    %c0_i32 = arith.constant 0 : i32
    %c0_i32_0 = arith.constant 0 : i32
    %c0_i32_1 = arith.constant 0 : i32
    return %c0_i32, %c0_i32_0 : i32, i32
  }
  func.func @transform_4(%arg0: i32) -> (i32, i32) {
    %c0_i32 = arith.constant 0 : i32
    %c0_i32_0 = arith.constant 0 : i32
    %c0_i32_1 = arith.constant 0 : i32
    return %c0_i32, %c0_i32_0 : i32, i32
  }
  func.func @transform_5(%arg0: i32) -> (i32, i32) {
    %c0_i32 = arith.constant 0 : i32
    %c0_i32_0 = arith.constant 0 : i32
    %c0_i32_1 = arith.constant 0 : i32
    return %c0_i32, %c0_i32_0 : i32, i32
  }
  func.func @transform_6(%arg0: i32) -> (i32, i32) {
    %c0_i32 = arith.constant 0 : i32
    %c0_i32_0 = arith.constant 0 : i32
    %c0_i32_1 = arith.constant 0 : i32
    return %c0_i32, %c0_i32_0 : i32, i32
  }
  func.func @transform_7(%arg0: i32) -> (i32, i32) {
    %c0_i32 = arith.constant 0 : i32
    %c0_i32_0 = arith.constant 0 : i32
    return %arg0, %c0_i32 : i32, i32
  }
}

</mosaic_0001>

<bundles_post_ra>
// kernel: tpu_custom_call.1
= control target key start
LH: loop header
LB: loop body
LE: loop exit
PB: predicated region body
PF: predicated region fallthrough
CT: control target
= control target key end

     0   :  { %12 = vsyncpa [#allocation3], 0  ;;  %s1455_s0 = inlined_call_operand.hbm [shape: f32[16,784], index: 0, kind: input, shape index: {}]   ;;  %s1456_s1 = inlined_call_operand.hbm [shape: bf16[784,128], index: 1, kind: input, shape index: {}]   ;;  %s1457_s2 = inlined_call_operand.vmem [shape: f32[1,128], index: 2, kind: input, shape index: {}]   ;;  %s1458_s3 = inlined_call_operand.hbm [shape: bf16[128,128], index: 3, kind: input, shape index: {}]   ;;  %s1459_s4 = inlined_call_operand.vmem [shape: f32[1,128], index: 4, kind: input, shape index: {}]   ;;  %s1460_s5 = inlined_call_operand.hbm [shape: bf16[128,128], index: 5, kind: input, shape index: {}]   ;;  %s1461_s6 = inlined_call_operand.vmem [shape: f32[1,128], index: 6, kind: input, shape index: {}]   ;;  %s1462_s7 = inlined_call_operand.hbm [shape: bf16[16,128], index: 7, kind: output, shape index: {}]  }
   0x1   :  { %13 = vsyncpa [#allocation6], 0 }
   0x2   :  { %14 = vsyncpa [#allocation9], 0  ;;  %s33_s26 = sshll.u32 %s1456_s1, 4  ;;  %s34_s26 = int_to_ptr.hbm [resolvable:$true] %s33_s26 }
   0x3   :  { %15 = vsyncpa [#allocation4], 0  ;;  %s1370_s27 = smov [#allocation5]   ;;  %s20_s8 = sshll.u32 %s1455_s0, 4  ;;  %s21_s8 = int_to_ptr.hbm [resolvable:$true] %s20_s8 }
   0x4   :  { %s35_s28 = sshll.u32 %s1370_s27, 4  ;;  %s1371_s9 = smov 64   ;;  %s36_s28 = int_to_ptr.vmem [resolvable:$true] %s35_s28 }
   0x5   :  { %s1372_s10 = smov 4   ;;  %s1373_s11 = smov [#allocation2]  }
   0x6   :  { %41 = dma.hbm_to_vmem [thread:$0]  %s34_s26, 6272, %s36_s28, [#allocation6], %s1371_s9, %s1371_s9, %s1372_s10  }
   0x7   :  { %s22_s12 = sshll.u32 %s1373_s11, 4  ;;  %s1374_s1 = smov 896   ;;  %s23_s12 = int_to_ptr.vmem [resolvable:$true] %s22_s12 }
   0x8   :  { %s1375_s13 = smov 56   ;;  %s48_s16 = sshll.u32 %s1458_s3, 4  ;;  %s49_s16 = int_to_ptr.hbm [resolvable:$true] %s48_s16 }
   0x9   :  { %28 = dma.hbm_to_vmem [thread:$0]  %s21_s8, 1792, %s23_s12, [#allocation3], %s1374_s1, %s1374_s1, %s1375_s13  }
   0xa   :  { %s1376_s17 = smov [#allocation7]   ;;  %s63_s20 = sshll.u32 %s1460_s5, 4  ;;  %s64_s20 = int_to_ptr.hbm [resolvable:$true] %s63_s20 }
   0xb   :  { %s50_s0 = sshll.u32 %s1376_s17, 4  ;;  %s1377_s21 = smov [#allocation8]   ;;  %s51_s0 = int_to_ptr.vmem [resolvable:$true] %s50_s0 }
   0xc   :  { %56 = dma.hbm_to_vmem [thread:$0]  %s49_s16, 1024, %s51_s0, [#allocation6], %s1371_s9, %s1371_s9, %s1372_s10  }
   0xd   :  { %s65_s22 = sshll.u32 %s1377_s21, 4  ;;  %s66_s22 = int_to_ptr.vmem [resolvable:$true] %s65_s22 }
   0xe   :  { %71 = dma.hbm_to_vmem [thread:$0]  %s64_s20, 1024, %s66_s22, [#allocation9], %s1371_s9, %s1371_s9, %s1372_s10  }
   0xf   :  { %1362 = dma.done.wait [#allocation3], 1792  }
  0x10   :  { %1363 = vsyncadd [#allocation3], 4294965504 }
  0x11   :  { %1364 = dma.done.wait [#allocation6], 7296  }
  0x12   :  { %1365 = vsyncadd [#allocation6], 4294960000 }
  0x13   :  { %1366 = dma.done.wait [#allocation9], 1024  }
  0x14   :  { %1367 = vsyncadd [#allocation9], 4294966272  ;;  %v1151_v0 = vld [vmem:[#allocation5 + $0x38] sm:$0xff]  ;;  %v1150_v4 = vld [vmem:[#allocation5 + $0x30] sm:$0xff]  ;;  %vm508_vm0 = vcmask 130048   ;;  %s864_s28 = sshll.u32 %s1462_s7, 4  ;;  %s865_s28 = int_to_ptr.hbm [resolvable:$true] %s864_s28 }
  0x15   :  { %v1159_v1 = vld [vmem:[#allocation5 + $0x78] sm:$0xff]  ;;  %512 = vmatpush.bf16.msra.mxu0 %v1151_v0  ;;  %v1158_v5 = vld [vmem:[#allocation5 + $0x70] sm:$0xff]  ;;  %v1149_v8 = vld [vmem:[#allocation5 + $0x28] sm:$0xff] }
  0x16   :  { %v1167_v2 = vld [vmem:[#allocation5 + $0xb8] sm:$0xff]  ;;  %526 = vmatpush.bf16.msra.mxu1 %v1159_v1  ;;  %v1166_v6 = vld [vmem:[#allocation5 + $0xb0] sm:$0xff]  ;;  %v1157_v9 = vld [vmem:[#allocation5 + $0x68] sm:$0xff] }
  0x17   :  { %v1175_v3 = vld [vmem:[#allocation5 + $0xf8] sm:$0xff]  ;;  %540 = vmatpush.bf16.msra.mxu2 %v1167_v2  ;;  %v1174_v7 = vld [vmem:[#allocation5 + $0xf0] sm:$0xff]  ;;  %v1165_v10 = vld [vmem:[#allocation5 + $0xa8] sm:$0xff] }
  0x18   :  { %554 = vmatpush.bf16.msra.mxu3 %v1175_v3  ;;  %v1173_v11 = vld [vmem:[#allocation5 + $0xe8] sm:$0xff]  ;;  %v1148_v12 = vld [vmem:[#allocation5 + $0x20] sm:$0xff]  ;;  %v1147_v16 = vld [vmem:[#allocation5 + $0x18] sm:$0xff] }
  0x19   :  { %513 = vmatpush.bf16.msra.mxu0 %v1150_v4  ;;  %v1156_v13 = vld [vmem:[#allocation5 + $0x60] sm:$0xff]  ;;  %v1155_v17 = vld [vmem:[#allocation5 + $0x58] sm:$0xff]  ;;  %v1146_v20 = vld [vmem:[#allocation5 + $0x10] sm:$0xff] }
  0x1a   :  { %527 = vmatpush.bf16.msra.mxu1 %v1158_v5  ;;  %v1164_v14 = vld [vmem:[#allocation5 + $0xa0] sm:$0xff]  ;;  %v1163_v18 = vld [vmem:[#allocation5 + $0x98] sm:$0xff]  ;;  %v1154_v21 = vld [vmem:[#allocation5 + $0x50] sm:$0xff] }
  0x1b   :  { %541 = vmatpush.bf16.msra.mxu2 %v1166_v6  ;;  %v1172_v15 = vld [vmem:[#allocation5 + $0xe0] sm:$0xff]  ;;  %v1171_v19 = vld [vmem:[#allocation5 + $0xd8] sm:$0xff]  ;;  %v1162_v22 = vld [vmem:[#allocation5 + $0x90] sm:$0xff] }
  0x1c   :  { %555 = vmatpush.bf16.msra.mxu3 %v1174_v7  ;;  %v1170_v23 = vld [vmem:[#allocation5 + $0xd0] sm:$0xff]  ;;  %v1145_v24 = vld [vmem:[#allocation5 + $0x8] sm:$0xff]  ;;  %v1144_v28 = vld [vmem:[#allocation5] sm:$0xff] }
  0x1d   :  { %514 = vmatpush.bf16.msra.mxu0 %v1149_v8  ;;  %v1153_v25 = vld [vmem:[#allocation5 + $0x48] sm:$0xff]  ;;  %v1152_v29 = vld [vmem:[#allocation5 + $0x40] sm:$0xff]  ;;  %v91_v30 = vld [vmem:[#allocation2] sm:$0xff] }
  0x1e   :  { %528 = vmatpush.bf16.msra.mxu1 %v1157_v9  ;;  %v1161_v26 = vld [vmem:[#allocation5 + $0x88] sm:$0xff]  ;;  %v92_v32 = vld [vmem:[#allocation2 + $0x8] sm:$0xff]  ;;  %v99_v33 = vld [vmem:[#allocation2 + $0x40] sm:$0xff] }
  0x1f   :  { %542 = vmatpush.bf16.msra.mxu2 %v1165_v10  ;;  %v1169_v27 = vld [vmem:[#allocation5 + $0xc8] sm:$0xff]  ;;  %v1183_v34 = vld [vmem:[#allocation5 + $0x138] sm:$0xff]  ;;  %v1160_v36 = vld [vmem:[#allocation5 + $0x80] sm:$0xff]  ;;  %v106_v43 = vpack.c.bf16 %v99_v33, %v92_v32 }
  0x20   :  { %556 = vmatpush.bf16.msra.mxu3 %v1173_v11  ;;  %v98_v31 = vld [vmem:[#allocation2 + $0x38] sm:$0xff]  ;;  %v1191_v35 = vld [vmem:[#allocation5 + $0x178] sm:$0xff]  ;;  %v1168_v37 = vld [vmem:[#allocation5 + $0xc0] sm:$0xff] }
  0x21   :  { %515 = vmatpush.bf16.msra.mxu0 %v1148_v12  ;;  %v93_v38 = vld [vmem:[#allocation2 + $0x10] sm:$0xff]  ;;  %v100_v39 = vld [vmem:[#allocation2 + $0x48] sm:$0xff]  ;;  %v105_v40 = vpack.c.bf16 %v98_v31, %v91_v30  ;;  %v94_v41 = vld [vmem:[#allocation2 + $0x18] sm:$0xff] }
  0x22   :  { %529 = vmatpush.bf16.msra.mxu1 %v1156_v13  ;;  %v101_v42 = vld [vmem:[#allocation2 + $0x50] sm:$0xff]  ;;  %v1182_v45 = vld [vmem:[#allocation5 + $0x130] sm:$0xff]  ;;  %v107_v47 = vpack.c.bf16 %v100_v39, %v93_v38  ;;  %v1181_v49 = vld [vmem:[#allocation5 + $0x128] sm:$0xff] }
  0x23   :  { %543 = vmatpush.bf16.msra.mxu2 %v1164_v14  ;;  %v1192_v44 = vld [vmem:[#allocation5 + $0x180] sm:$0xff]  ;;  %v1190_v46 = vld [vmem:[#allocation5 + $0x170] sm:$0xff]  ;;  %v108_v48 = vpack.c.bf16 %v101_v42, %v94_v41  ;;  %v1189_v50 = vld [vmem:[#allocation5 + $0x168] sm:$0xff] }
  0x24   :  { %557 = vmatpush.bf16.msra.mxu3 %v1172_v15  ;;  %v1180_v51 = vld [vmem:[#allocation5 + $0x120] sm:$0xff]  ;;  %v1179_v53 = vld [vmem:[#allocation5 + $0x118] sm:$0xff]  ;;  %v1178_v57 = vld [vmem:[#allocation5 + $0x110] sm:$0xff] }
  0x25   :  { %516 = vmatpush.bf16.msra.mxu0 %v1147_v16  ;;  %v1188_v52 = vld [vmem:[#allocation5 + $0x160] sm:$0xff]  ;;  %v1187_v54 = vld [vmem:[#allocation5 + $0x158] sm:$0xff]  ;;  %v1186_v58 = vld [vmem:[#allocation5 + $0x150] sm:$0xff] }
  0x26   :  { %530 = vmatpush.bf16.msra.mxu1 %v1155_v17  ;;  %v97_v55 = vld [vmem:[#allocation2 + $0x30] sm:$0xff]  ;;  %v104_v56 = vld [vmem:[#allocation2 + $0x68] sm:$0xff]  ;;  %v1177_v60 = vld [vmem:[#allocation5 + $0x108] sm:$0xff] }
  0x27   :  { %544 = vmatpush.bf16.msra.mxu2 %v1163_v18  ;;  %v111_v59 = vpack.c.bf16 %v104_v56, %v97_v55  ;;  %v1185_v61 = vld [vmem:[#allocation5 + $0x148] sm:$0xff]  ;;  %v1176_v62 = vld [vmem:[#allocation5 + $0x100] sm:$0xff]  ;;  %v95_v0 = vld [vmem:[#allocation2 + $0x20] sm:$0xff] }
  0x28   :  { %558 = vmatpush.bf16.msra.mxu3 %v1171_v19  ;;  %v1184_v63 = vld [vmem:[#allocation5 + $0x140] sm:$0xff]  ;;  %v102_v1 = vld [vmem:[#allocation2 + $0x58] sm:$0xff]  ;;  %v96_v2 = vld [vmem:[#allocation2 + $0x28] sm:$0xff] }
  0x29   :  { %517 = vmatpush.bf16.msra.mxu0 %v1146_v20  ;;  %v103_v3 = vld [vmem:[#allocation2 + $0x60] sm:$0xff]  ;;  %v109_v4 = vpack.c.bf16 %v102_v1, %v95_v0  ;;  %v1200_v6 = vld [vmem:[#allocation7 + $0x38] sm:$0xff]  ;;  %v1199_v7 = vld [vmem:[#allocation7 + $0x30] sm:$0xff] }
  0x2a   :  { %531 = vmatpush.bf16.msra.mxu1 %v1154_v21  ;;  %v110_v5 = vpack.c.bf16 %v103_v3, %v96_v2  ;;  %v1198_v8 = vld [vmem:[#allocation7 + $0x28] sm:$0xff]  ;;  %v1197_v9 = vld [vmem:[#allocation7 + $0x20] sm:$0xff]  ;;  %v1196_v10 = vld [vmem:[#allocation7 + $0x18] sm:$0xff] }
  0x2b   :  { %545 = vmatpush.bf16.msra.mxu2 %v1162_v22  ;;  %v1195_v11 = vld [vmem:[#allocation7 + $0x10] sm:$0xff]  ;;  %v1194_v12 = vld [vmem:[#allocation7 + $0x8] sm:$0xff]  ;;  %v1193_v16 = vld [vmem:[#allocation7] sm:$0xff] }
  0x2c   :  { %559 = vmatpush.bf16.msra.mxu3 %v1170_v23  ;;  %v1223_v17 = vld [vmem:[%s1457_s2] ss:$0 sm:$0xff]  ;;  %v1201_v56 = vld [vmem:[#allocation8] sm:$0xff] }
  0x2d   :  { %518 = vmatpush.bf16.msra.mxu0 %v1145_v24 }
  0x2e   :  { %532 = vmatpush.bf16.msra.mxu1 %v1153_v25 }
  0x2f   :  { %546 = vmatpush.bf16.msra.mxu2 %v1161_v26 }
  0x30   :  { %560 = vmatpush.bf16.msra.mxu3 %v1169_v27 }
  0x31   :  { %519 = vmatpush.bf16.msra.mxu0 %v1144_v28 }
  0x32   :  { %533 = vmatpush.bf16.msra.mxu1 %v1152_v29 }
  0x33   :  { %547 = vmatpush.bf16.msra.mxu2 %v1160_v36 }
  0x34   :  { %561 = vmatpush.bf16.msra.mxu3 %v1168_v37  ;;  %520 = vmatmul.bf16.vlgmr.msra.gmra.mxu0 %v105_v40 }
  0x35   :  { %568 = vmatpush.bf16.msrb.mxu0 %v1183_v34  ;;  %534 = vmatmul.bf16.vlgmr.msra.gmra.mxu1 %v106_v43 }
  0x36   :  { %582 = vmatpush.bf16.msrb.mxu1 %v1191_v35  ;;  %548 = vmatmul.bf16.vlgmr.msra.gmra.mxu2 %v107_v47  ;;  %v1207_v47 = vld [vmem:[#allocation8 + $0x30] sm:$0xff] }
  0x37   :  { %603 = vmatpush.bf16.msrb.mxu2 %v1192_v44  ;;  %562 = vmatmul.bf16.vlgmr.msra.gmra.mxu3 %v108_v48  ;;  %v1206_v48 = vld [vmem:[#allocation8 + $0x28] sm:$0xff] }
  0x38   :  { %681 = vmatpush.bf16.msrb.mxu3 %v1200_v6 }
  0x39   :  { %569 = vmatpush.bf16.msrb.mxu0 %v1182_v45 }
  0x3a   :  { %583 = vmatpush.bf16.msrb.mxu1 %v1190_v46  ;;  %v1208_v46 = vld [vmem:[#allocation8 + $0x38] sm:$0xff] }
  0x3b   :  { %802 = vmatpush.bf16.msra.mxu2 %v1208_v46 }
  0x3c   :  { %682 = vmatpush.bf16.msrb.mxu3 %v1199_v7 }
  0x3d   :  { %570 = vmatpush.bf16.msrb.mxu0 %v1181_v49  ;;  %v1205_v49 = vld [vmem:[#allocation8 + $0x20] sm:$0xff] }
  0x3e   :  { %584 = vmatpush.bf16.msrb.mxu1 %v1189_v50  ;;  %v1204_v50 = vld [vmem:[#allocation8 + $0x18] sm:$0xff] }
  0x3f   :  { %803 = vmatpush.bf16.msra.mxu2 %v1207_v47 }
  0x40   :  { %683 = vmatpush.bf16.msrb.mxu3 %v1198_v8 }
  0x41   :  { %571 = vmatpush.bf16.msrb.mxu0 %v1180_v51  ;;  %v1203_v51 = vld [vmem:[#allocation8 + $0x10] sm:$0xff] }
  0x42   :  { %585 = vmatpush.bf16.msrb.mxu1 %v1188_v52  ;;  %v1224_v52 = vld [vmem:[%s1459_s4] ss:$0 sm:$0xff] }
  0x43   :  { %804 = vmatpush.bf16.msra.mxu2 %v1206_v48 }
  0x44   :  { %684 = vmatpush.bf16.msrb.mxu3 %v1197_v9 }
  0x45   :  { %572 = vmatpush.bf16.msrb.mxu0 %v1179_v53  ;;  %v1202_v53 = vld [vmem:[#allocation8 + $0x8] sm:$0xff] }
  0x46   :  { %586 = vmatpush.bf16.msrb.mxu1 %v1187_v54  ;;  %1075 = vmatmul.msk.bf16.vlgmr.msrb.gmra.mxu2 %vm508_vm0, %v111_v59 }
  0x47   :  { %805 = vmatpush.bf16.msra.mxu2 %v1205_v49 }
  0x48   :  { %685 = vmatpush.bf16.msrb.mxu3 %v1196_v10 }
  0x49   :  { %573 = vmatpush.bf16.msrb.mxu0 %v1178_v57 }
  0x4a   :  { %587 = vmatpush.bf16.msrb.mxu1 %v1186_v58 }
  0x4b   :  { %806 = vmatpush.bf16.msra.mxu2 %v1204_v50 }
  0x4c   :  { %686 = vmatpush.bf16.msrb.mxu3 %v1195_v11 }
  0x4d   :  { %574 = vmatpush.bf16.msrb.mxu0 %v1177_v60 }
  0x4e   :  { %588 = vmatpush.bf16.msrb.mxu1 %v1185_v61 }
  0x4f   :  { %807 = vmatpush.bf16.msra.mxu2 %v1203_v51 }
  0x50   :  { %687 = vmatpush.bf16.msrb.mxu3 %v1194_v12 }
  0x51   :  { %575 = vmatpush.bf16.msrb.mxu0 %v1176_v62 }
  0x52   :  { %589 = vmatpush.bf16.msrb.mxu1 %v1184_v63 }
  0x53   :  { %808 = vmatpush.bf16.msra.mxu2 %v1202_v53 }
  0x54   :  { %576 = vmatmul.bf16.vlgmr.msrb.gmra.mxu0 %v109_v4  ;;  %688 = vmatpush.bf16.msrb.mxu3 %v1193_v16 }
  0x55   :  { %590 = vmatmul.bf16.vlgmr.msrb.gmra.mxu1 %v110_v5 }
  0x57   :  { %809 = vmatpush.bf16.msra.mxu2 %v1201_v56 }
  0xb1   :  { %v521_v13 = vpop.f32.mrf.mxu0 }
  0xb2   :  { %v535_v14 = vpop.f32.mrf.mxu1  ;;  %v522_v18 = vadd.f32 %v1223_v17, %v521_v13 }
  0xb4   :  { %v536_v22 = vadd.f32 %v535_v14, %v522_v18 }
  0xb9   :  { %v549_v15 = vpop.f32.mrf.mxu2  ;;  %v523_v19 = vpop.f32.mrf.mxu0 }
  0xba   :  { %v537_v20 = vpop.f32.mrf.mxu1  ;;  %v563_v23 = vpop.f32.mrf.mxu3  ;;  %v524_v24 = vadd.f32 %v1223_v17, %v523_v19  ;;  %v550_v25 = vadd.f32 %v549_v15, %v536_v22  ;;  %v1225_v22 = vld [vmem:[%s1461_s6] ss:$0 sm:$0xff]  ;;  %s1378_s6 = smov [#allocation10]  }
  0xbb   :  { %s862_s25 = sshll.u32 %s1378_s6, 4  ;;  %s863_s25 = int_to_ptr.vmem [resolvable:$true] %s862_s25 }
  0xbc   :  { %v538_v26 = vadd.f32 %v537_v20, %v524_v24  ;;  %v564_v29 = vadd.f32 %v563_v23, %v550_v25 }
  0xc1   :  { %v551_v21 = vpop.f32.mrf.mxu2 }
  0xc2   :  { %v552_v31 = vadd.f32 %v551_v21, %v538_v26  ;;  %v565_v33 = vpop.f32.mrf.mxu3 }
  0xc4   :  { %v566_v34 = vadd.f32 %v565_v33, %v552_v31 }
  0xc9   :  { %v605_v30 = vpop.f32.mrf.mxu2 }
  0xd1   :  { %v577_v27 = vpop.f32.mrf.mxu0  ;;  %v607_v41 = vpop.f32.mrf.mxu2 }
  0xd2   :  { %v591_v28 = vpop.f32.mrf.mxu1  ;;  %v578_v32 = vadd.f32 %v577_v27, %v564_v29 }
  0xd4   :  { %v592_v35 = vadd.f32 %v591_v28, %v578_v32 }
  0xd6   :  { %v606_v39 = vadd.f32 %v605_v30, %v592_v35 }
  0xd8   :  { %v610_v43 = vmax.f32 %v606_v39, 0.0 }
  0xd9   :  { %v579_v36 = vpop.f32.mrf.mxu0 }
  0xda   :  { %v580_v37 = vadd.f32 %v579_v36, %v566_v34  ;;  %v593_v38 = vpop.f32.mrf.mxu1 }
  0xdc   :  { %v594_v40 = vadd.f32 %v593_v38, %v580_v37 }
  0xde   :  { %v608_v42 = vadd.f32 %v607_v41, %v594_v40 }
  0xe0   :  { %v611_v44 = vmax.f32 %v608_v42, 0.0 }
  0xe2   :  { %v612_v45 = vpack.c.bf16 %v611_v44, %v610_v43 }
  0xe4   :  { %689 = vmatmul.bf16.vlgmr.msrb.gmra.mxu3 %v612_v45 }
 0x167   :  { %v690_v54 = vpop.f32.mrf.mxu3 }
 0x168   :  { %v691_v55 = vadd.f32 %v1224_v52, %v690_v54 }
 0x16a   :  { %v1108_v57 = vmul.f32 -1.442695, %v691_v55 }
 0x16c   :  { %1226 = vpow2.f32 %v1108_v57 }
 0x16f   :  { %v692_v58 = vpop.f32.mrf.mxu3 }
 0x170   :  { %v693_v59 = vadd.f32 %v1224_v52, %v692_v58 }
 0x172   :  { %v1227_v60 = vpop.eup %1226  ;;  %v1109_v61 = vmul.f32 -1.442695, %v693_v59 }
 0x173   :  { %v701_v62 = vadd.f32 1.0, %v1227_v60 }
 0x174   :  { %1228 = vpow2.f32 %v1109_v61 }
 0x175   :  { %1230 = vrcp.f32 %v701_v62  ;;  %vm708_vm2 = vweird.f32 %v701_v62  ;;  %v714_v9 = vand.u32 2147483648, %v701_v62  ;;  %v712_v11 = vand.u32 2147483647, %v701_v62 }
 0x177   :  { %v715_v16 = vor.u32 1.1754944e-38, %v714_v9  ;;  %vm713_vm7 = vcmp.eq.f32.partialorder %v712_v11, 8.507059e+37 }
 0x17a   :  { %v1229_v63 = vpop.eup %1228 }
 0x17b   :  { %v1231_v0 = vpop.eup %1230  ;;  %v702_v1 = vadd.f32 1.0, %v1229_v63 }
 0x17c   :  { %v704_v2 = vmul.f32 %v1231_v0, %v701_v62  ;;  %vm709_vm1 = vweird.f32 %v1231_v0 }
 0x17d   :  { %1232 = vrcp.f32 %v702_v1  ;;  %v729_v10 = vand.u32 2147483648, %v702_v1  ;;  %v727_v13 = vand.u32 2147483647, %v702_v1  ;;  %vm710_vm4 = vmor %vm708_vm2, %vm709_vm1  ;;  %vm723_vm5 = vweird.f32 %v702_v1 }
 0x17e   :  { %v705_v3 = vsub.f32 1.0, %v704_v2 }
 0x17f   :  { %v730_v17 = vor.u32 1.1754944e-38, %v729_v10  ;;  %vm728_vm8 = vcmp.eq.f32.partialorder %v727_v13, 8.507059e+37 }
 0x180   :  { %v706_v4 = vmul.f32 %v1231_v0, %v705_v3 }
 0x182   :  { %v707_v8 = vadd.f32 %v1231_v0, %v706_v4 }
 0x183   :  { %v1233_v5 = vpop.eup %1232 }
 0x184   :  { %v719_v6 = vmul.f32 %v1233_v5, %v702_v1  ;;  %vm724_vm3 = vweird.f32 %v1233_v5  ;;  %v711_v14 = vsel %vm710_vm4, %v1231_v0, %v707_v8 }
 0x185   :  { %vm725_vm6 = vmor %vm723_vm5, %vm724_vm3  ;;  %v716_v19 = vsel %vm713_vm7, %v715_v16, %v711_v14 }
 0x186   :  { %v720_v7 = vsub.f32 1.0, %v719_v6 }
 0x188   :  { %v721_v12 = vmul.f32 %v1233_v5, %v720_v7 }
 0x18a   :  { %v722_v15 = vadd.f32 %v1233_v5, %v721_v12 }
 0x18c   :  { %v726_v18 = vsel %vm725_vm6, %v1233_v5, %v722_v15 }
 0x18d   :  { %v731_v20 = vsel %vm728_vm8, %v730_v17, %v726_v18 }
 0x18e   :  { %v733_v21 = vpack.c.bf16 %v731_v20, %v716_v19 }
 0x190   :  { %810 = vmatmul.bf16.vlgmr.msra.gmra.mxu2 %v733_v21 }
 0x213   :  { %v811_v23 = vpop.f32.mrf.mxu2 }
 0x214   :  { %v812_v24 = vadd.f32 %v1225_v22, %v811_v23 }
 0x216   :  { %v1142_v25 = vmul.f32 -1.442695, %v812_v24 }
 0x218   :  { %1234 = vpow2.f32 %v1142_v25 }
 0x21b   :  { %v813_v26 = vpop.f32.mrf.mxu2 }
 0x21c   :  { %v814_v27 = vadd.f32 %v1225_v22, %v813_v26 }
 0x21e   :  { %v1235_v28 = vpop.eup %1234  ;;  %v1143_v29 = vmul.f32 -1.442695, %v814_v27 }
 0x21f   :  { %v822_v30 = vadd.f32 1.0, %v1235_v28 }
 0x220   :  { %1236 = vpow2.f32 %v1143_v29 }
 0x221   :  { %1238 = vrcp.f32 %v822_v30  ;;  %vm829_vm10 = vweird.f32 %v822_v30  ;;  %v835_v41 = vand.u32 2147483648, %v822_v30  ;;  %v833_v43 = vand.u32 2147483647, %v822_v30 }
 0x223   :  { %v836_v48 = vor.u32 1.1754944e-38, %v835_v41  ;;  %vm834_vm15 = vcmp.eq.f32.partialorder %v833_v43, 8.507059e+37 }
 0x226   :  { %v1237_v31 = vpop.eup %1236 }
 0x227   :  { %v1239_v32 = vpop.eup %1238  ;;  %v823_v33 = vadd.f32 1.0, %v1237_v31 }
 0x228   :  { %v825_v34 = vmul.f32 %v1239_v32, %v822_v30  ;;  %vm830_vm9 = vweird.f32 %v1239_v32 }
 0x229   :  { %1240 = vrcp.f32 %v823_v33  ;;  %v850_v42 = vand.u32 2147483648, %v823_v33  ;;  %v848_v45 = vand.u32 2147483647, %v823_v33  ;;  %vm831_vm12 = vmor %vm829_vm10, %vm830_vm9  ;;  %vm844_vm13 = vweird.f32 %v823_v33 }
 0x22a   :  { %v826_v35 = vsub.f32 1.0, %v825_v34 }
 0x22b   :  { %v851_v49 = vor.u32 1.1754944e-38, %v850_v42  ;;  %vm849_vm0 = vcmp.eq.f32.partialorder %v848_v45, 8.507059e+37 }
 0x22c   :  { %v827_v36 = vmul.f32 %v1239_v32, %v826_v35 }
 0x22e   :  { %v828_v40 = vadd.f32 %v1239_v32, %v827_v36 }
 0x22f   :  { %v1241_v37 = vpop.eup %1240 }
 0x230   :  { %v840_v38 = vmul.f32 %v1241_v37, %v823_v33  ;;  %vm845_vm11 = vweird.f32 %v1241_v37  ;;  %v832_v46 = vsel %vm831_vm12, %v1239_v32, %v828_v40 }
 0x231   :  { %vm846_vm14 = vmor %vm844_vm13, %vm845_vm11  ;;  %v837_v51 = vsel %vm834_vm15, %v836_v48, %v832_v46 }
 0x232   :  { %v841_v39 = vsub.f32 1.0, %v840_v38 }
 0x234   :  { %v842_v44 = vmul.f32 %v1241_v37, %v841_v39 }
 0x236   :  { %v843_v47 = vadd.f32 %v1241_v37, %v842_v44 }
 0x238   :  { %v847_v50 = vsel %vm846_vm14, %v1241_v37, %v843_v47 }
 0x239   :  { %v852_v52 = vsel %vm849_vm0, %v851_v49, %v847_v50 }
 0x23a   :  { %v1212_v53 = vpack.c.bf16 %v852_v52, %v837_v51 }
 0x23c   :  { %1213 = vst [vmem:[#allocation10] sm:$0xff] %v1212_v53  }
 0x23d   :  { %870 = dma.vmem_to_hbm [thread:$0]  %s863_s25, 128, %s865_s28, [#allocation4], %s1371_s9, %s1371_s9, %s1372_s10  }
 0x23e   :  { %1368 = dma.done.wait [#allocation4], 128  }
 0x23f   :  { %1369 = vsyncadd [#allocation4], 4294967168 }
 0x240   :  { %875 = vsyncpa [#allocation3], 1 }
 0x241   :  { %876 = vsyncpa [#allocation6], 1 }
 0x242   :  { %877 = vsyncpa [#allocation9], 1 }
 0x243   :  { %878 = vsyncpa [#allocation4], 1 }

</bundles_post_ra>
